<compile_context>
chip_gen: v5e
topology: v5e:2x2
jax: 0.10.0
libtpu: 0.0.40
codegen_flags: <defaults>
</compile_context>

<pallas_src>
from functools import partial

import jax
import jax.numpy as jnp
from jax.experimental import pallas as pl
from jax.experimental.pallas import tpu as pltpu

LRELU_SLOPE = 0.01
BN_EPS = 1e-5


def _fused_block_kernel(x_ref, *args, kt, t, s, num_layers):
    """Fused causal-temporal-conv + BN(eval, scale folded) + LeakyReLU stack.

    Ref layout (one (batch, spatial-tile) element per grid step):
      x_ref            : (1, C0, T*s)         input block, time-major lanes
      args[2l]         : (kt, C_{l+1}, C_l)   layer-l conv weight, BN scale folded
      args[2l+1]       : (C_{l+1}, 1)         layer-l bias (beta - mean*scale)
      args[2L]         : (1, C_L, T*s)        output block
      args[2L+1+l]     : (1, C_{l+1}, T*s)    VMEM scratch for layer-l output
                                              (only for l < L-1; last layer
                                              accumulates into the output block)
    `s` (spatial tile width) is a multiple of 128, so every tap offset d*s is
    lane-aligned.
    """
    L = num_layers
    weights = [args[2 * l] for l in range(L)]
    biases = [args[2 * l + 1] for l in range(L)]
    o_ref = args[2 * L]
    bufs = list(args[2 * L + 1:])

    pad = kt - 1
    cur = x_ref                                      # (1, C_in, T*s)

    for layer in range(L):
        w_ref = weights[layer]                       # (kt, c_out, c_in)
        b_ref = biases[layer]                        # (c_out, 1)
        dst = o_ref if layer == L - 1 else bufs[layer]   # (1, c_out, T*s)

        # Last tap (tau = pad) sees every output frame: full-width dot,
        # plain assignment => no zero init of the accumulator.
        dst[0] = jnp.dot(w_ref[pad], cur[0],
                         preferred_element_type=jnp.float32).astype(dst.dtype)

        # Earlier taps (tau = pad - d) only reach output frames >= d; the
        # contribution is a prefix of the input dotted into a lane-aligned
        # suffix of the destination.  No causal zero padding is materialized.
        for d in range(1, pad + 1):
            if d >= t:
                continue
            tau = pad - d
            contrib = jnp.dot(w_ref[tau], cur[0, :, : (t - d) * s],
                              preferred_element_type=jnp.float32)
            dst[0, :, d * s:] = dst[0, :, d * s:] + contrib.astype(dst.dtype)

        # Epilogue: eval-mode BN (scale already folded into W) + LeakyReLU.
        y = dst[0].astype(jnp.float32) + b_ref[...]
        y = jnp.where(y > 0, y, LRELU_SLOPE * y)
        dst[0] = y.astype(dst.dtype)

        cur = dst


def _pick_spatial_tiles(n, hw, t, max_c, *, target_steps=4,
                        step_vmem_budget=4 << 20):
    """Split each H*W plane into `st` lane-aligned tiles.

    Grow the split while it stays a multiple of 128 lanes and either (a) the
    grid is still too short for pipelining / v7x megacore sharding, or (b) a
    single step's largest activation slab would blow the per-step VMEM budget
    (relevant for v7x's 64 MiB at production resolutions).
    """
    def aligned(k):
        return hw % k == 0 and (hw // k) % 128 == 0

    def step_bytes(k):
        return max_c * t * (hw // k) * 4

    st = 1
    while aligned(st * 2) and (n * st < target_steps
                               or step_bytes(st) > step_vmem_budget):
        st *= 2
    return st


def temporal_causal_block(x, params, *, spatial_tiles=None):
    """Full TemporalCausalBlock forward (dropout_rate = 0.0 path).

    x: (N, C_in, T, H, W); params[l]: dict with 'w_fused' (kt, C_out, C_in)
    (BN scale folded) and 'bias' (C_out, 1).
    """
    n, c0, t, h, w = x.shape
    hw = h * w
    num_layers = len(params)
    kt = params[0]["w_fused"].shape[0]
    c_last = params[-1]["w_fused"].shape[1]
    max_c = max(p["w_fused"].shape[1] for p in params)

    if spatial_tiles is None:
        spatial_tiles = _pick_spatial_tiles(n, hw, t, max_c)
    st = spatial_tiles
    s_tile = hw // st
    nb = n * st

    # Layout plumbing (wrapper-side): each grid step gets a contiguous,
    # lane-dense (C, T*s_tile) slab for one (batch, spatial-tile) pair.
    x_blk = (x.reshape(n, c0, t, st, s_tile)
              .transpose(0, 3, 1, 2, 4)
              .reshape(nb, c0, t * s_tile))

    inputs = [x_blk]
    in_specs = [pl.BlockSpec((1, c0, t * s_tile), lambda i: (i, 0, 0))]
    channels = [c0]
    for p in params:
        kt_l, c_out, c_in = p["w_fused"].shape
        # Constant index maps: weights/biases stay resident across the grid.
        in_specs.append(pl.BlockSpec((kt_l, c_out, c_in), lambda i: (0, 0, 0)))
        in_specs.append(pl.BlockSpec((c_out, 1), lambda i: (0, 0)))
        inputs.append(p["w_fused"])
        inputs.append(p["bias"])
        channels.append(c_out)

    # One unpadded VMEM scratch per non-final layer output (the final layer
    # accumulates straight into the output block).
    scratch_shapes = [pltpu.VMEM((1, channels[l + 1], t * s_tile), jnp.float32)
                      for l in range(num_layers - 1)]

    out_blk = pl.pallas_call(
        partial(_fused_block_kernel, kt=kt, t=t, s=s_tile,
                num_layers=num_layers),
        out_shape=jax.ShapeDtypeStruct((nb, c_last, t * s_tile), x.dtype),
        grid_spec=pltpu.PrefetchScalarGridSpec(
            num_scalar_prefetch=0,
            grid=(nb,),
            in_specs=in_specs,
            out_specs=pl.BlockSpec((1, c_last, t * s_tile),
                                   lambda i: (i, 0, 0)),
            scratch_shapes=scratch_shapes,
        ),
        compiler_params=pltpu.CompilerParams(
            dimension_semantics=("parallel",)),
    )(*inputs)

    return (out_blk.reshape(n, st, c_last, t, s_tile)
                   .transpose(0, 2, 3, 1, 4)
                   .reshape(n, c_last, t, h, w))


def make_params(key, num_layers, kernel_size, in_channels, out_channels):
    """Deterministic parameter init mirroring the module's channel schedule.

    Stores both the raw PyTorch-style conv weight (for the reference) and the
    BN-scale-folded, tap-major kernel weight.
    """
    params = []
    intermed = out_channels
    c_in = in_channels
    for i in range(num_layers):
        intermed *= 2
        if i == num_layers - 1:
            intermed = out_channels
        key, kw, kg, kb, km, kv = jax.random.split(key, 6)
        # PyTorch Conv3d weight (C_out, C_in, kt, 1, 1) -> keep (C_out, C_in, kt).
        w_torch = 0.1 * jax.random.normal(kw, (intermed, c_in, kernel_size),
                                          jnp.float32)
        gamma = jax.random.uniform(kg, (intermed,), jnp.float32, 0.5, 1.5)
        beta = 0.1 * jax.random.normal(kb, (intermed,), jnp.float32)
        mean = 0.1 * jax.random.normal(km, (intermed,), jnp.float32)
        var = jax.random.uniform(kv, (intermed,), jnp.float32, 0.5, 1.5)
        scale = gamma / jnp.sqrt(var + BN_EPS)
        bias = beta - mean * scale
        # Tap-major (kt, C_out, C_in) with BN scale folded along C_out.
        w_tap = jnp.transpose(w_torch, (2, 0, 1))
        w_fused = w_tap * scale.reshape(1, intermed, 1)
        params.append(dict(
            w_torch=w_torch,
            w_fused=w_fused,
            scale=scale.reshape(intermed, 1),
            bias=bias.reshape(intermed, 1),
        ))
        c_in = intermed
    return params


def temporal_causal_block_ref(x, params):
    """Pure-JAX reference matching the PyTorch module (unfused BN)."""
    for p in params:
        w_torch = p["w_torch"]                      # (C_out, C_in, kt)
        kt = w_torch.shape[2]
        t = x.shape[2]
        xp = jnp.pad(x, ((0, 0), (0, 0), (kt - 1, 0), (0, 0), (0, 0)))
        y = 0.0
        for tau in range(kt):
            y = y + jnp.einsum("oi,nithw->nothw",
                               w_torch[:, :, tau], xp[:, :, tau:tau + t])
        scale = p["scale"].reshape(1, -1, 1, 1, 1)
        bias = p["bias"].reshape(1, -1, 1, 1, 1)
        y = y * scale + bias
        x = jnp.where(y > 0, y, LRELU_SLOPE * y)
    return x


if __name__ == "__main__":
    # Module config: num_layers=2, kernel_size=3, in_channels=4, out_channels=4,
    # dropout_rate=0.0 (=> learning_without_dropout), step unused.
    N, C_IN, T, H, W = 2, 4, 8, 16, 16
    NUM_LAYERS, KT, C_OUT = 2, 3, 4

    key = jax.random.PRNGKey(0)
    key, kx = jax.random.split(key)
    x = jax.random.normal(kx, (N, C_IN, T, H, W), jnp.float32)

    params = make_params(key, NUM_LAYERS, KT, C_IN, C_OUT)

    out = jax.block_until_ready(temporal_causal_block(x, params))
    ref = jax.block_until_ready(temporal_causal_block_ref(x, params))

    assert out.shape == (N, C_OUT, T, H, W), out.shape
    assert jnp.allclose(out, ref, atol=1e-4, rtol=1e-4), \
        float(jnp.max(jnp.abs(out - ref)))
    print("KERNEL_OK")
</pallas_src>

<mosaic_0001>
module attributes {stable_mosaic.version = 11 : i64} {
  func.func @_fused_block_kernel(%arg0: i32, %arg1: memref<1x4x1024xf32, #tpu.memory_space<vmem>>, %arg2: memref<3x8x4xf32, #tpu.memory_space<vmem>>, %arg3: memref<8x1xf32, #tpu.memory_space<vmem>>, %arg4: memref<3x4x8xf32, #tpu.memory_space<vmem>>, %arg5: memref<4x1xf32, #tpu.memory_space<vmem>>, %arg6: memref<1x4x1024xf32, #tpu.memory_space<vmem>>, %arg7: memref<1x8x1024xf32, #tpu.memory_space<vmem>>) attributes {dimension_semantics = [#tpu.dimension_semantics<parallel>], iteration_bounds = array<i64: 4>, scalar_prefetch = 0 : i64, scratch_operands = 1 : i64, tpu.core_type = #tpu.core_type<tc>, window_params = [{transform_indices = @transform_0, window_bounds = array<i64: 1, 4, 1024>}, {pipeline_mode = #tpu.pipeline_mode<synchronous>, transform_indices = @transform_1, window_bounds = array<i64: 3, 8, 4>}, {pipeline_mode = #tpu.pipeline_mode<synchronous>, transform_indices = @transform_2, window_bounds = array<i64: 8, 1>}, {pipeline_mode = #tpu.pipeline_mode<synchronous>, transform_indices = @transform_3, window_bounds = array<i64: 3, 4, 8>}, {pipeline_mode = #tpu.pipeline_mode<synchronous>, transform_indices = @transform_4, window_bounds = array<i64: 4, 1>}, {transform_indices = @transform_5, window_bounds = array<i64: 1, 4, 1024>}]} {
    %c2 = arith.constant 2 : index
    %c0 = arith.constant 0 : index
    %c0_0 = arith.constant 0 : index
    %0 = vector.load %arg2[%c2, %c0, %c0_0] : memref<3x8x4xf32, #tpu.memory_space<vmem>>, vector<1x8x4xf32>
    %1 = vector.shape_cast %0 : vector<1x8x4xf32> to vector<8x4xf32>
    %c0_1 = arith.constant 0 : index
    %c0_2 = arith.constant 0 : index
    %c0_3 = arith.constant 0 : index
    %2 = vector.load %arg1[%c0_1, %c0_2, %c0_3] : memref<1x4x1024xf32, #tpu.memory_space<vmem>>, vector<1x4x1024xf32>
    %3 = vector.shape_cast %2 : vector<1x4x1024xf32> to vector<4x1024xf32>
    %cst = arith.constant dense<0.000000e+00> : vector<8x1024xf32>
    %4 = tpu.matmul %1, %3, %cst {dimension_numbers = #tpu.dot_dimension_numbers<[1], [0], [0], [1], [0, 0, 1, 1], [], []>} : vector<8x4xf32>, vector<4x1024xf32>, vector<8x1024xf32> -> vector<8x1024xf32>
    %c0_4 = arith.constant 0 : index
    %c0_5 = arith.constant 0 : index
    %c0_6 = arith.constant 0 : index
    %5 = vector.load %arg7[%c0_4, %c0_5, %c0_6] : memref<1x8x1024xf32, #tpu.memory_space<vmem>>, vector<1x8x1024xf32>
    %6 = vector.shape_cast %5 : vector<1x8x1024xf32> to vector<8x1024xf32>
    %7 = vector.shape_cast %4 : vector<8x1024xf32> to vector<1x8x1024xf32>
    tpu.vector_store %arg7[%c0_4, %c0_5, %c0_6], %7 {strides = array<i32>} : memref<1x8x1024xf32, #tpu.memory_space<vmem>>, vector<1x8x1024xf32>,
    %c1 = arith.constant 1 : index
    %c0_7 = arith.constant 0 : index
    %c0_8 = arith.constant 0 : index
    %8 = vector.load %arg2[%c1, %c0_7, %c0_8] : memref<3x8x4xf32, #tpu.memory_space<vmem>>, vector<1x8x4xf32>
    %9 = vector.shape_cast %8 : vector<1x8x4xf32> to vector<8x4xf32>
    %c0_9 = arith.constant 0 : index
    %c0_10 = arith.constant 0 : index
    %c0_11 = arith.constant 0 : index
    %10 = vector.load %arg1[%c0_9, %c0_10, %c0_11] : memref<1x4x1024xf32, #tpu.memory_space<vmem>>, vector<1x4x896xf32>
    %11 = vector.shape_cast %10 : vector<1x4x896xf32> to vector<4x896xf32>
    %cst_12 = arith.constant dense<0.000000e+00> : vector<8x896xf32>
    %12 = tpu.matmul %9, %11, %cst_12 {dimension_numbers = #tpu.dot_dimension_numbers<[1], [0], [0], [1], [0, 0, 1, 1], [], []>} : vector<8x4xf32>, vector<4x896xf32>, vector<8x896xf32> -> vector<8x896xf32>
    %c0_13 = arith.constant 0 : index
    %c0_14 = arith.constant 0 : index
    %c128 = arith.constant 128 : index
    %13 = vector.load %arg7[%c0_13, %c0_14, %c128] : memref<1x8x1024xf32, #tpu.memory_space<vmem>>, vector<1x8x896xf32>
    %14 = vector.shape_cast %13 : vector<1x8x896xf32> to vector<8x896xf32>
    %15 = arith.addf %14, %12 : vector<8x896xf32>
    %c0_15 = arith.constant 0 : index
    %c0_16 = arith.constant 0 : index
    %c128_17 = arith.constant 128 : index
    %16 = vector.load %arg7[%c0_15, %c0_16, %c128_17] : memref<1x8x1024xf32, #tpu.memory_space<vmem>>, vector<1x8x896xf32>
    %17 = vector.shape_cast %16 : vector<1x8x896xf32> to vector<8x896xf32>
    %18 = vector.shape_cast %15 : vector<8x896xf32> to vector<1x8x896xf32>
    tpu.vector_store %arg7[%c0_15, %c0_16, %c128_17], %18 {strides = array<i32>} : memref<1x8x1024xf32, #tpu.memory_space<vmem>>, vector<1x8x896xf32>,
    %c0_18 = arith.constant 0 : index
    %c0_19 = arith.constant 0 : index
    %c0_20 = arith.constant 0 : index
    %19 = vector.load %arg2[%c0_18, %c0_19, %c0_20] : memref<3x8x4xf32, #tpu.memory_space<vmem>>, vector<1x8x4xf32>
    %20 = vector.shape_cast %19 : vector<1x8x4xf32> to vector<8x4xf32>
    %c0_21 = arith.constant 0 : index
    %c0_22 = arith.constant 0 : index
    %c0_23 = arith.constant 0 : index
    %21 = vector.load %arg1[%c0_21, %c0_22, %c0_23] : memref<1x4x1024xf32, #tpu.memory_space<vmem>>, vector<1x4x768xf32>
    %22 = vector.shape_cast %21 : vector<1x4x768xf32> to vector<4x768xf32>
    %cst_24 = arith.constant dense<0.000000e+00> : vector<8x768xf32>
    %23 = tpu.matmul %20, %22, %cst_24 {dimension_numbers = #tpu.dot_dimension_numbers<[1], [0], [0], [1], [0, 0, 1, 1], [], []>} : vector<8x4xf32>, vector<4x768xf32>, vector<8x768xf32> -> vector<8x768xf32>
    %c0_25 = arith.constant 0 : index
    %c0_26 = arith.constant 0 : index
    %c256 = arith.constant 256 : index
    %24 = vector.load %arg7[%c0_25, %c0_26, %c256] : memref<1x8x1024xf32, #tpu.memory_space<vmem>>, vector<1x8x768xf32>
    %25 = vector.shape_cast %24 : vector<1x8x768xf32> to vector<8x768xf32>
    %26 = arith.addf %25, %23 : vector<8x768xf32>
    %c0_27 = arith.constant 0 : index
    %c0_28 = arith.constant 0 : index
    %c256_29 = arith.constant 256 : index
    %27 = vector.load %arg7[%c0_27, %c0_28, %c256_29] : memref<1x8x1024xf32, #tpu.memory_space<vmem>>, vector<1x8x768xf32>
    %28 = vector.shape_cast %27 : vector<1x8x768xf32> to vector<8x768xf32>
    %29 = vector.shape_cast %26 : vector<8x768xf32> to vector<1x8x768xf32>
    tpu.vector_store %arg7[%c0_27, %c0_28, %c256_29], %29 {strides = array<i32>} : memref<1x8x1024xf32, #tpu.memory_space<vmem>>, vector<1x8x768xf32>,
    %c0_30 = arith.constant 0 : index
    %c0_31 = arith.constant 0 : index
    %c0_32 = arith.constant 0 : index
    %30 = vector.load %arg7[%c0_30, %c0_31, %c0_32] : memref<1x8x1024xf32, #tpu.memory_space<vmem>>, vector<1x8x1024xf32>
    %31 = vector.shape_cast %30 : vector<1x8x1024xf32> to vector<8x1024xf32>
    %c0_33 = arith.constant 0 : index
    %c0_34 = arith.constant 0 : index
    %32 = vector.load %arg3[%c0_33, %c0_34] : memref<8x1xf32, #tpu.memory_space<vmem>>, vector<8x1xf32>
    %33 = vector.broadcast %32 : vector<8x1xf32> to vector<8x1024xf32>
    %34 = arith.addf %31, %33 : vector<8x1024xf32>
    %cst_35 = arith.constant 0.000000e+00 : f32
    %35 = vector.broadcast %cst_35 : f32 to vector<8x1024xf32>
    %36 = arith.cmpf ogt, %34, %35 : vector<8x1024xf32>
    %cst_36 = arith.constant 0.00999999977 : f32
    %37 = vector.broadcast %cst_36 : f32 to vector<8x1024xf32>
    %38 = arith.mulf %37, %34 : vector<8x1024xf32>
    %39 = arith.select %36, %34, %38 : vector<8x1024xi1>, vector<8x1024xf32>
    %c0_37 = arith.constant 0 : index
    %c0_38 = arith.constant 0 : index
    %c0_39 = arith.constant 0 : index
    %40 = vector.load %arg7[%c0_37, %c0_38, %c0_39] : memref<1x8x1024xf32, #tpu.memory_space<vmem>>, vector<1x8x1024xf32>
    %41 = vector.shape_cast %40 : vector<1x8x1024xf32> to vector<8x1024xf32>
    %42 = vector.shape_cast %39 : vector<8x1024xf32> to vector<1x8x1024xf32>
    tpu.vector_store %arg7[%c0_37, %c0_38, %c0_39], %42 {strides = array<i32>} : memref<1x8x1024xf32, #tpu.memory_space<vmem>>, vector<1x8x1024xf32>,
    %c2_40 = arith.constant 2 : index
    %c0_41 = arith.constant 0 : index
    %c0_42 = arith.constant 0 : index
    %43 = vector.load %arg4[%c2_40, %c0_41, %c0_42] : memref<3x4x8xf32, #tpu.memory_space<vmem>>, vector<1x4x8xf32>
    %44 = vector.shape_cast %43 : vector<1x4x8xf32> to vector<4x8xf32>
    %c0_43 = arith.constant 0 : index
    %c0_44 = arith.constant 0 : index
    %c0_45 = arith.constant 0 : index
    %45 = vector.load %arg7[%c0_43, %c0_44, %c0_45] : memref<1x8x1024xf32, #tpu.memory_space<vmem>>, vector<1x8x1024xf32>
    %46 = vector.shape_cast %45 : vector<1x8x1024xf32> to vector<8x1024xf32>
    %cst_46 = arith.constant dense<0.000000e+00> : vector<4x1024xf32>
    %47 = tpu.matmul %44, %46, %cst_46 {dimension_numbers = #tpu.dot_dimension_numbers<[1], [0], [0], [1], [0, 0, 1, 1], [], []>} : vector<4x8xf32>, vector<8x1024xf32>, vector<4x1024xf32> -> vector<4x1024xf32>
    %c0_47 = arith.constant 0 : index
    %c0_48 = arith.constant 0 : index
    %c0_49 = arith.constant 0 : index
    %48 = vector.load %arg6[%c0_47, %c0_48, %c0_49] : memref<1x4x1024xf32, #tpu.memory_space<vmem>>, vector<1x4x1024xf32>
    %49 = vector.shape_cast %48 : vector<1x4x1024xf32> to vector<4x1024xf32>
    %50 = vector.shape_cast %47 : vector<4x1024xf32> to vector<1x4x1024xf32>
    tpu.vector_store %arg6[%c0_47, %c0_48, %c0_49], %50 {strides = array<i32>} : memref<1x4x1024xf32, #tpu.memory_space<vmem>>, vector<1x4x1024xf32>,
    %c1_50 = arith.constant 1 : index
    %c0_51 = arith.constant 0 : index
    %c0_52 = arith.constant 0 : index
    %51 = vector.load %arg4[%c1_50, %c0_51, %c0_52] : memref<3x4x8xf32, #tpu.memory_space<vmem>>, vector<1x4x8xf32>
    %52 = vector.shape_cast %51 : vector<1x4x8xf32> to vector<4x8xf32>
    %c0_53 = arith.constant 0 : index
    %c0_54 = arith.constant 0 : index
    %c0_55 = arith.constant 0 : index
    %53 = vector.load %arg7[%c0_53, %c0_54, %c0_55] : memref<1x8x1024xf32, #tpu.memory_space<vmem>>, vector<1x8x896xf32>
    %54 = vector.shape_cast %53 : vector<1x8x896xf32> to vector<8x896xf32>
    %cst_56 = arith.constant dense<0.000000e+00> : vector<4x896xf32>
    %55 = tpu.matmul %52, %54, %cst_56 {dimension_numbers = #tpu.dot_dimension_numbers<[1], [0], [0], [1], [0, 0, 1, 1], [], []>} : vector<4x8xf32>, vector<8x896xf32>, vector<4x896xf32> -> vector<4x896xf32>
    %c0_57 = arith.constant 0 : index
    %c0_58 = arith.constant 0 : index
    %c128_59 = arith.constant 128 : index
    %56 = vector.load %arg6[%c0_57, %c0_58, %c128_59] : memref<1x4x1024xf32, #tpu.memory_space<vmem>>, vector<1x4x896xf32>
    %57 = vector.shape_cast %56 : vector<1x4x896xf32> to vector<4x896xf32>
    %58 = arith.addf %57, %55 : vector<4x896xf32>
    %c0_60 = arith.constant 0 : index
    %c0_61 = arith.constant 0 : index
    %c128_62 = arith.constant 128 : index
    %59 = vector.load %arg6[%c0_60, %c0_61, %c128_62] : memref<1x4x1024xf32, #tpu.memory_space<vmem>>, vector<1x4x896xf32>
    %60 = vector.shape_cast %59 : vector<1x4x896xf32> to vector<4x896xf32>
    %61 = vector.shape_cast %58 : vector<4x896xf32> to vector<1x4x896xf32>
    tpu.vector_store %arg6[%c0_60, %c0_61, %c128_62], %61 {strides = array<i32>} : memref<1x4x1024xf32, #tpu.memory_space<vmem>>, vector<1x4x896xf32>,
    %c0_63 = arith.constant 0 : index
    %c0_64 = arith.constant 0 : index
    %c0_65 = arith.constant 0 : index
    %62 = vector.load %arg4[%c0_63, %c0_64, %c0_65] : memref<3x4x8xf32, #tpu.memory_space<vmem>>, vector<1x4x8xf32>
    %63 = vector.shape_cast %62 : vector<1x4x8xf32> to vector<4x8xf32>
    %c0_66 = arith.constant 0 : index
    %c0_67 = arith.constant 0 : index
    %c0_68 = arith.constant 0 : index
    %64 = vector.load %arg7[%c0_66, %c0_67, %c0_68] : memref<1x8x1024xf32, #tpu.memory_space<vmem>>, vector<1x8x768xf32>
    %65 = vector.shape_cast %64 : vector<1x8x768xf32> to vector<8x768xf32>
    %cst_69 = arith.constant dense<0.000000e+00> : vector<4x768xf32>
    %66 = tpu.matmul %63, %65, %cst_69 {dimension_numbers = #tpu.dot_dimension_numbers<[1], [0], [0], [1], [0, 0, 1, 1], [], []>} : vector<4x8xf32>, vector<8x768xf32>, vector<4x768xf32> -> vector<4x768xf32>
    %c0_70 = arith.constant 0 : index
    %c0_71 = arith.constant 0 : index
    %c256_72 = arith.constant 256 : index
    %67 = vector.load %arg6[%c0_70, %c0_71, %c256_72] : memref<1x4x1024xf32, #tpu.memory_space<vmem>>, vector<1x4x768xf32>
    %68 = vector.shape_cast %67 : vector<1x4x768xf32> to vector<4x768xf32>
    %69 = arith.addf %68, %66 : vector<4x768xf32>
    %c0_73 = arith.constant 0 : index
    %c0_74 = arith.constant 0 : index
    %c256_75 = arith.constant 256 : index
    %70 = vector.load %arg6[%c0_73, %c0_74, %c256_75] : memref<1x4x1024xf32, #tpu.memory_space<vmem>>, vector<1x4x768xf32>
    %71 = vector.shape_cast %70 : vector<1x4x768xf32> to vector<4x768xf32>
    %72 = vector.shape_cast %69 : vector<4x768xf32> to vector<1x4x768xf32>
    tpu.vector_store %arg6[%c0_73, %c0_74, %c256_75], %72 {strides = array<i32>} : memref<1x4x1024xf32, #tpu.memory_space<vmem>>, vector<1x4x768xf32>,
    %c0_76 = arith.constant 0 : index
    %c0_77 = arith.constant 0 : index
    %c0_78 = arith.constant 0 : index
    %73 = vector.load %arg6[%c0_76, %c0_77, %c0_78] : memref<1x4x1024xf32, #tpu.memory_space<vmem>>, vector<1x4x1024xf32>
    %74 = vector.shape_cast %73 : vector<1x4x1024xf32> to vector<4x1024xf32>
    %c0_79 = arith.constant 0 : index
    %c0_80 = arith.constant 0 : index
    %75 = vector.load %arg5[%c0_79, %c0_80] : memref<4x1xf32, #tpu.memory_space<vmem>>, vector<4x1xf32>
    %76 = vector.broadcast %75 : vector<4x1xf32> to vector<4x1024xf32>
    %77 = arith.addf %74, %76 : vector<4x1024xf32>
    %cst_81 = arith.constant 0.000000e+00 : f32
    %78 = vector.broadcast %cst_81 : f32 to vector<4x1024xf32>
    %79 = arith.cmpf ogt, %77, %78 : vector<4x1024xf32>
    %cst_82 = arith.constant 0.00999999977 : f32
    %80 = vector.broadcast %cst_82 : f32 to vector<4x1024xf32>
    %81 = arith.mulf %80, %77 : vector<4x1024xf32>
    %82 = arith.select %79, %77, %81 : vector<4x1024xi1>, vector<4x1024xf32>
    %c0_83 = arith.constant 0 : index
    %c0_84 = arith.constant 0 : index
    %c0_85 = arith.constant 0 : index
    %83 = vector.load %arg6[%c0_83, %c0_84, %c0_85] : memref<1x4x1024xf32, #tpu.memory_space<vmem>>, vector<1x4x1024xf32>
    %84 = vector.shape_cast %83 : vector<1x4x1024xf32> to vector<4x1024xf32>
    %85 = vector.shape_cast %82 : vector<4x1024xf32> to vector<1x4x1024xf32>
    tpu.vector_store %arg6[%c0_83, %c0_84, %c0_85], %85 {strides = array<i32>} : memref<1x4x1024xf32, #tpu.memory_space<vmem>>, vector<1x4x1024xf32>,
    return
  }
  func.func @transform_0(%arg0: i32) -> (i32, i32, i32) {
    %c0_i32 = arith.constant 0 : i32
    %c0_i32_0 = arith.constant 0 : i32
    %c0_i32_1 = arith.constant 0 : i32
    return %arg0, %c0_i32, %c0_i32_0 : i32, i32, i32
  }
  func.func @transform_1(%arg0: i32) -> (i32, i32, i32) {
    %c0_i32 = arith.constant 0 : i32
    %c0_i32_0 = arith.constant 0 : i32
    %c0_i32_1 = arith.constant 0 : i32
    %c0_i32_2 = arith.constant 0 : i32
    return %c0_i32, %c0_i32_0, %c0_i32_1 : i32, i32, i32
  }
  func.func @transform_2(%arg0: i32) -> (i32, i32) {
    %c0_i32 = arith.constant 0 : i32
    %c0_i32_0 = arith.constant 0 : i32
    %c0_i32_1 = arith.constant 0 : i32
    return %c0_i32, %c0_i32_0 : i32, i32
  }
  func.func @transform_3(%arg0: i32) -> (i32, i32, i32) {
    %c0_i32 = arith.constant 0 : i32
    %c0_i32_0 = arith.constant 0 : i32
    %c0_i32_1 = arith.constant 0 : i32
    %c0_i32_2 = arith.constant 0 : i32
    return %c0_i32, %c0_i32_0, %c0_i32_1 : i32, i32, i32
  }
  func.func @transform_4(%arg0: i32) -> (i32, i32) {
    %c0_i32 = arith.constant 0 : i32
    %c0_i32_0 = arith.constant 0 : i32
    %c0_i32_1 = arith.constant 0 : i32
    return %c0_i32, %c0_i32_0 : i32, i32
  }
  func.func @transform_5(%arg0: i32) -> (i32, i32, i32) {
    %c0_i32 = arith.constant 0 : i32
    %c0_i32_0 = arith.constant 0 : i32
    %c0_i32_1 = arith.constant 0 : i32
    return %arg0, %c0_i32, %c0_i32_0 : i32, i32, i32
  }
}

</mosaic_0001>

<bundles_post_ra>
// kernel: tpu_custom_call.1
= control target key start
LH: loop header
LB: loop body
LE: loop exit
PB: predicated region body
PF: predicated region fallthrough
CT: control target
= control target key end

     0   :  { %10 = vsyncpa [#allocation4], 0  ;;  %s2077_s0 = inlined_call_operand.hbm [shape: f32[4,4,1024], index: 0, kind: input, shape index: {}]   ;;  %s2078_s1 = inlined_call_operand.vmem [shape: f32[3,8,4], index: 1, kind: input, shape index: {}]   ;;  %s2079_s2 = inlined_call_operand.vmem [shape: f32[8,1], index: 2, kind: input, shape index: {}]   ;;  %s2080_s3 = inlined_call_operand.vmem [shape: f32[3,4,8], index: 3, kind: input, shape index: {}]   ;;  %s2081_s4 = inlined_call_operand.vmem [shape: f32[4,1], index: 4, kind: input, shape index: {}]   ;;  %s2082_s5 = inlined_call_operand.hbm [shape: f32[4,4,1024], index: 5, kind: output, shape index: {}]  }
   0x1   :  { %12 = vsyncpa [#allocation4 + $0x1], 0 }
   0x2   :  { %13 = vsyncpa [#allocation5], 0 }
   0x3   :  { %15 = vsyncpa [#allocation5 + $0x1], 0  ;;  %s1798_s18 = smov 0   ;;  %s1800_s19 = smov 0  }
   0x4   :  { %s1802_s20 = smov 0   ;;  %s1804_s21 = smov 0  }
   0x5 LB: > { %s1819_s22 = sadd.s32 4294967295, %s1764_s21   ;;  %s1536_s23 = sadd.s32 4294967294, %s1764_s21   ;;  %s1764_s21 = sphi %s1804_s21, %s2091_s21   ;;  %s1760_s20 = sphi %s1802_s20, %s2090_s20   ;;  %s1756_s19 = sphi %s1800_s19, %s2089_s19   ;;  %s1752_s18 = sphi %s1798_s18, %s2088_s18  }
   0x6   : > { %s1823_s24 = sadd.s32 1, %s1764_s21   ;;  %s28_s25 = sadd.s32 1, %s1760_s20 }
   0x7   : > { %s25_s26 = ssub.s32 %s1764_s21, %s1823_s24  ;;  %p35_p0 = scmp.ne.s32.totalorder %s1760_s20, %s1756_s19 }
   0x8   : > { %p26_p1 = scmp.eq.s32.totalorder %s25_s26, 0  ;;  %p36_p2 = scmp.eq.s32.totalorder %s1764_s21, 0 }
   0x9   : > { %p41_p3 = scmp.ne.s32.totalorder %s1756_s19, %s1752_s18  ;;  %p42_p4 = scmp.eq.s32.totalorder %s1819_s22, 0 }
   0xa   : > { %s1835_s27 = scalar_select %p26_p1, %s1760_s20, %s28_s25  }
   0xb   : > { %p1837_p5 = por %p36_p2, %p35_p0  ;;  %p1841_p6 = por %p42_p4, %p41_p3 }
   0xc   : > { %p149_p7 = scmp.eq.s32.totalorder %s1819_s22, 3  ;;  %p155_p8 = scmp.eq.s32.totalorder %s1536_s23, 3 }
   0xd   : > { %p1631_p9 = scmp.lt.s32.totalorder %s1764_s21, 4  ;;  %s187_s7 = sand.u32 1, %s1760_s20  }
   0xe   : > { %p1847_p10 = por %p149_p7, %p35_p0  ;;  %p1851_p11 = por %p155_p8, %p41_p3 }
   0xf   : > { %s1617_s8 = sshll.u32 %s1764_s21, 5  ;;  %s1539_s9 = sshll.u32 %s187_s7, 5 }
  0x10   : > { %s196_s12 = scalar_lea.hbm %s2077_s0, %s1617_s8  ;;  %s191_s14 = scalar_lea.vmem [#allocation3], %s1539_s9 }
  0x11   : > { %s198_s13 = sshll.u32 %s196_s12, 4  ;;  %s200_s15 = sshll.u32 %s191_s14, 4  ;;  %s199_s13 = int_to_ptr.hbm [resolvable:$true] %s198_s13  ;;  %s201_s15 = int_to_ptr.vmem [resolvable:$true] %s200_s15 }
  0x12   : > { %p1862_p12 = pnand %p1631_p9, %p1837_p5  ;;  %p1542_p13 = scmp.ge.s32.totalorder %s1764_s21, 1 }
  0x13   : > { %p205_p0 = scmp.lt.s32.totalorder %s1764_s21, 5  ;;  %s188_s17 = scalar_lea.sflag [#allocation4], %s187_s7 }
  0x14   : > { %s1668_s23 = sshra.s32 %s199_s13, 4  ;;  %p1672_p2 = pneg %p1862_p12  ;;  %s1669_s23 = int_to_ptr.hbm [resolvable:$true] %s1668_s23 }
  0x15   : > { %s1670_s25 = scalar_lea.hbm %s1669_s23, 32  ;;  %s1675_s28 = scalar_lea.hbm %s2077_s0, 128 }
  0x16   : > { %p1671_p1 = scmp.ne.s32.totalorder %s1669_s23, %s1670_s25  ;;  %p1676_p5 = scmp.lt.s32.totalorder %s1669_s23, %s2077_s0 }
  0x17   : > { %p1677_p7 = scmp.lt.s32.totalorder %s1675_s28, %s1670_s25 }
  0x18   : > { %p1673_p3 = pnand %p1672_p2, %p1671_p1 }
  0x19   : > { %p1678_p8 = por %p1677_p7, %p1676_p5 }
  0x1a   : > { %p1674_p4 = pneg %p1673_p3 }
  0x1c   : > { %p1679_p9 = pnand %p1678_p8, %p1674_p4 }
  0x1e   : > { %1682 = shalt.err (!%p1679_p9)
}
  0x1f   : > { %1626 = dma.hbm_to_vmem [thread:$0]  (!%p1862_p12), %s199_s13, 512, %s201_s15, %s188_s17  }
  0x20   : > { %p206_p1 = pnand %p1542_p13, %p205_p0 }
  0x21   : > { %s1883_s7 = sand.u32 (!%p206_p1), 1, %s1756_s19  }
  0x22   : > { %209 = sbr.rel (%p206_p1) target bundleno = 396 (0x18c), region = 40  ;;  %s1543_s11 = sshll.u32 (!%p206_p1), %s1883_s7, 5 }
  0x23   : > { %s212_s12 = scalar_lea.sflag (!%p206_p1), [#allocation4], %s1883_s7  ;;  %s215_s14 = scalar_lea.vmem (!%p206_p1), [#allocation3], %s1543_s11 }
  0x27   : > { %1743 = dma.done.wait (%p1841_p6), %s212_s12, 512  }
  0x28   : > { %1745 = vsyncadd (%p1841_p6), %s212_s12, 4294966784  ;;  %v1766_v0 = vmov 0   ;;  %v245_v1 = vld [vmem:[%s215_s14] sm:$0xff]  ;;  %v246_v2 = vld [vmem:[%s215_s14 + $0x8] sm:$0xff]  ;;  %vm272_vm0 = vcmask 1043456   ;;  %vm268_vm1 = vcmask 31744  }
  0x29   : > { %1667 = vset.pattern.permute.xlu0 %v1766_v0  ;;  %253 = vst [vmem:[#allocation1] ss:$2 sm:$0xff] %v245_v1  ;;  %v247_v3 = vld [vmem:[%s215_s14 + $0x10] sm:$0xff]  ;;  %v248_v4 = vld [vmem:[%s215_s14 + $0x18] sm:$0xff]  ;;  %v1545_v6 = vld [vmem:[%s2078_s1 + $0x10] sm:$0xff]  ;;  %vm894_vm3 = vcmask 64512  }
  0x2a   : > { %255 = vst [vmem:[#allocation1 + $0x10] ss:$2 sm:$0xff] %v246_v2  ;;  %v838_v5 = vld [vmem:[%s2079_s2] sm:$0xff]  ;;  %v1562_v24 = vld [vmem:[%s2078_s1 + $0x8] sm:$0xff]  ;;  %s2013_s16 = scalar_lea.vmem [#allocation6], %s1543_s11  ;;  %s1618_s11 = sshll.u32 %s1819_s22, 5 }
  0x2b   : > { %257 = vst [vmem:[#allocation1 + $0x20] ss:$2 sm:$0xff] %v247_v3  ;;  %841 = vperm.xlu0 %1667, %v838_v5   ;;  %v462_v10 = vld [vmem:[%s215_s14 + $0x18] sm:$0xf]  ;;  %v1959_v38 = vld [vmem:[%s2080_s3 + $0x8] sm:$0xf]  ;;  %s1461_s23 = scalar_lea.hbm %s2082_s5, %s1618_s11 }
  0x2c   : > { %259 = vst [vmem:[#allocation1 + $0x30] ss:$2 sm:$0xff] %v248_v4  ;;  %v1419_v22 = vld [vmem:[%s2081_s4] sm:$0xf]  ;;  %s1463_s25 = sshll.u32 %s2013_s16, 4  ;;  %s1465_s26 = sshll.u32 %s1461_s23, 4  ;;  %s1464_s25 = int_to_ptr.vmem [resolvable:$true] %s1463_s25  ;;  %s1466_s26 = int_to_ptr.hbm [resolvable:$true] %s1465_s26 }
  0x2d   : > { %v659_v31 = vld [vmem:[%s2078_s1] sm:$0xff]  ;;  %s1450_s22 = scalar_lea.sflag [#allocation5], %s1883_s7  ;;  %s1712_s8 = sshra.s32 %s1466_s26, 4  ;;  %s1713_s8 = int_to_ptr.hbm [resolvable:$true] %s1712_s8 }
  0x2e   : > { %s1714_s28 = scalar_lea.hbm %s1713_s8, 32  ;;  %s1718_s12 = scalar_lea.hbm %s2082_s5, 128 }
  0x2f   : > { %p1715_p6 = scmp.ne.s32.totalorder %s1713_s8, %s1714_s28  ;;  %p1719_p0 = scmp.lt.s32.totalorder %s1713_s8, %s2082_s5 }
  0x30   : > { %v260_v7 = vld.sshfl [vmem:[#allocation1] sm:$0xff pattern:$0x75316420]  ;;  %v261_v8 = vld.sshfl [vmem:[#allocation1 + $0x8] sm:$0xff pattern:$0x75316420]  ;;  %p1720_p2 = scmp.lt.s32.totalorder %s1718_s12, %s1714_s28 }
  0x31   : > { %1546 = vmatpush.msk.msra.mxu0 %vm272_vm0, %v260_v7  ;;  %1548 = vmatpush.msk.msra.mxu1 %vm272_vm0, %v261_v8  ;;  %467 = vst [vmem:[#allocation1] ss:$2 sm:$0xff] %v245_v1  ;;  %v262_v9 = vld.sshfl [vmem:[#allocation1 + $0x10] sm:$0xff pattern:$0x75316420]  ;;  %p1716_p12 = pnand %p1715_p6, %p1847_p10 }
  0x32   : > { %1550 = vmatpush.msk.msra.mxu2 %vm272_vm0, %v262_v9  ;;  %v263_v11 = vld.sshfl [vmem:[#allocation1 + $0x18] sm:$0xff pattern:$0x75316420]  ;;  %1547 = vmatmul.msk.f32.vlgmr.msra.gmra.mxu0 %vm268_vm1, %v1545_v6  ;;  %v264_v12 = vld.sshfl [vmem:[#allocation1 + $0x20] sm:$0xff pattern:$0x75316420]  ;;  %p1721_p3 = por %p1720_p2, %p1719_p0 }
  0x33   : > { %1552 = vmatpush.msk.msra.mxu3 %vm272_vm0, %v263_v11  ;;  %469 = vst [vmem:[#allocation1 + $0x10] ss:$2 sm:$0xff] %v246_v2  ;;  %1549 = vmatmul.msk.f32.vlgmr.msra.gmra.mxu1 %vm268_vm1, %v1545_v6  ;;  %v265_v13 = vld.sshfl [vmem:[#allocation1 + $0x28] sm:$0xff pattern:$0x75316420]  ;;  %p1717_p13 = pneg %p1716_p12 }
  0x34   : > { %1551 = vmatmul.msk.f32.vlgmr.msra.gmra.mxu2 %vm268_vm1, %v1545_v6  ;;  %1553 = vmatmul.msk.f32.vlgmr.msra.gmra.mxu3 %vm268_vm1, %v1545_v6  ;;  %471 = vst [vmem:[#allocation1 + $0x20] ss:$2 sm:$0xff] %v247_v3  ;;  %v266_v14 = vld.sshfl [vmem:[#allocation1 + $0x30] sm:$0xff pattern:$0x75316420] }
  0x35   : > { %1554 = vmatpush.msk.msrb.mxu0 %vm272_vm0, %v264_v12  ;;  %1556 = vmatpush.msk.msrb.mxu1 %vm272_vm0, %v265_v13  ;;  %v267_v15 = vld.sshfl [vmem:[#allocation1 + $0x38] sm:$0xff pattern:$0x75316420]  ;;  %p1722_p4 = pnand %p1721_p3, %p1717_p13 }
  0x36   : > { %1558 = vmatpush.msk.msrb.mxu2 %vm272_vm0, %v266_v14  ;;  %1560 = vmatpush.msk.msrb.mxu3 %vm272_vm0, %v267_v15  ;;  %473 = vst [vmem:[#allocation1 + $0x30] ss:$2 sm:$0xff] %v462_v10 }
  0x37   : > { %1422 = vperm.xlu0 %1667, %v1419_v22  }
  0x38   : > { %v474_v16 = vld.sshfl [vmem:[#allocation1] sm:$0xff pattern:$0x75316420]  ;;  %v475_v17 = vld.sshfl [vmem:[#allocation1 + $0x8] sm:$0xff pattern:$0x75316420] }
  0x39   : > { %1563 = vmatpush.msk.msra.mxu0 %vm272_vm0, %v474_v16  ;;  %1565 = vmatpush.msk.msra.mxu1 %vm272_vm0, %v475_v17  ;;  %666 = vst [vmem:[#allocation1] ss:$2 sm:$0xff] %v245_v1 }
  0x3a   : > { %1555 = vmatmul.msk.f32.vlgmr.msrb.gmra.mxu0 %vm268_vm1, %v1545_v6  ;;  %v476_v18 = vld.sshfl [vmem:[#allocation1 + $0x10] sm:$0xff pattern:$0x75316420]  ;;  %v477_v19 = vld.sshfl [vmem:[#allocation1 + $0x18] sm:$0xff pattern:$0x75316420] }
  0x3b   : > { %1557 = vmatmul.msk.f32.vlgmr.msrb.gmra.mxu1 %vm268_vm1, %v1545_v6  ;;  %1567 = vmatpush.msk.msra.mxu2 %vm272_vm0, %v476_v18  ;;  %668 = vst [vmem:[#allocation1 + $0x10] ss:$2 sm:$0xff] %v246_v2  ;;  %v478_v20 = vld.sshfl [vmem:[#allocation1 + $0x20] sm:$0xff pattern:$0x75316420] }
  0x3c   : > { %1559 = vmatmul.msk.f32.vlgmr.msrb.gmra.mxu2 %vm268_vm1, %v1545_v6  ;;  %1561 = vmatmul.msk.f32.vlgmr.msrb.gmra.mxu3 %vm268_vm1, %v1545_v6  ;;  %v479_v21 = vld.sshfl [vmem:[#allocation1 + $0x28] sm:$0xff pattern:$0x75316420] }
  0x3d   : > { %1569 = vmatpush.msk.msra.mxu3 %vm272_vm0, %v477_v19  ;;  %1571 = vmatpush.msk.msrb.mxu0 %vm272_vm0, %v478_v20  ;;  %670 = vst [vmem:[#allocation1 + $0x20] ss:$2 sm:$0xff] %v247_v3  ;;  %v480_v23 = vld.sshfl [vmem:[#allocation1 + $0x30] sm:$0xff pattern:$0x75316420] }
  0x3e   : > { %1573 = vmatpush.msk.msrb.mxu1 %vm272_vm0, %v479_v21  ;;  %1575 = vmatpush.msk.msrb.mxu2 %vm272_vm0, %v480_v23 }
  0x40   : > { %v671_v25 = vld.sshfl [vmem:[#allocation1] sm:$0xff pattern:$0x75316420]  ;;  %v672_v26 = vld.sshfl [vmem:[#allocation1 + $0x8] sm:$0xff pattern:$0x75316420] }
  0x41   : > { %1577 = vmatpush.msk.msrb.mxu3 %vm272_vm0, %v671_v25 }
  0x42   : > { %1564 = vmatmul.msk.f32.vlgmr.msra.gmra.mxu0 %vm268_vm1, %v1562_v24  ;;  %v673_v27 = vld.sshfl [vmem:[#allocation1 + $0x10] sm:$0xff pattern:$0x75316420]  ;;  %v674_v28 = vld.sshfl [vmem:[#allocation1 + $0x18] sm:$0xff pattern:$0x75316420] }
  0x43   : > { %1566 = vmatmul.msk.f32.vlgmr.msra.gmra.mxu1 %vm268_vm1, %v1562_v24  ;;  %1579 = vmatpush.msk.msra.mxu0 %vm272_vm0, %v672_v26 }
  0x44   : > { %1568 = vmatmul.msk.f32.vlgmr.msra.gmra.mxu2 %vm268_vm1, %v1562_v24  ;;  %1570 = vmatmul.msk.f32.vlgmr.msra.gmra.mxu3 %vm268_vm1, %v1562_v24  ;;  %v675_v29 = vld.sshfl [vmem:[#allocation1 + $0x20] sm:$0xff pattern:$0x75316420]  ;;  %v676_v30 = vld.sshfl [vmem:[#allocation1 + $0x28] sm:$0xff pattern:$0x75316420] }
  0x45   : > { %1581 = vmatpush.msk.msra.mxu1 %vm272_vm0, %v673_v27  ;;  %1583 = vmatpush.msk.msra.mxu2 %vm272_vm0, %v674_v28  ;;  %v1598_v28 = vld [vmem:[%s2080_s3 + $0x4] sm:$0xf] }
  0x46   : > { %1585 = vmatpush.msk.msra.mxu3 %vm272_vm0, %v675_v29  ;;  %v1261_v29 = vld [vmem:[%s2080_s3] sm:$0xf] }
  0x4a   : > { %1572 = vmatmul.msk.f32.vlgmr.msrb.gmra.mxu0 %vm268_vm1, %v1562_v24 }
  0x4b   : > { %1574 = vmatmul.msk.f32.vlgmr.msrb.gmra.mxu1 %vm268_vm1, %v1562_v24  ;;  %1587 = vmatpush.msk.msrb.mxu0 %vm272_vm0, %v676_v30 }
  0x4c   : > { %1576 = vmatmul.msk.f32.vlgmr.msrb.gmra.mxu2 %vm268_vm1, %v1562_v24  ;;  %1578 = vmatmul.msk.f32.vlgmr.msrb.gmra.mxu3 %vm268_vm1, %v659_v31 }
  0x52   : > { %1580 = vmatmul.msk.f32.vlgmr.msra.gmra.mxu0 %vm268_vm1, %v659_v31 }
  0x53   : > { %1582 = vmatmul.msk.f32.vlgmr.msra.gmra.mxu1 %vm268_vm1, %v659_v31 }
  0x54   : > { %1584 = vmatmul.msk.f32.vlgmr.msra.gmra.mxu2 %vm268_vm1, %v659_v31  ;;  %1586 = vmatmul.msk.f32.vlgmr.msra.gmra.mxu3 %vm268_vm1, %v659_v31 }
  0x5a   : > { %1588 = vmatmul.msk.f32.vlgmr.msrb.gmra.mxu0 %vm268_vm1, %v659_v31 }
  0x9d   : > { %v1950_v32 = vpop.permute.xlu0 %841 }
  0xaf   : > { %v306_v33 = vpop.f32.mrf.mxu0 }
  0xb0   : > { %v326_v34 = vpop.f32.mrf.mxu1  ;;  %v844_v35 = vadd.f32 %v1950_v32, %v306_v33 }
  0xb2   : > { %vm852_vm2 = vcmp.gt.f32.partialorder %v844_v35, 0.0  ;;  %v860_v36 = vmul.f32 0.01, %v844_v35 }
  0xb4   : > { %v1953_v37 = vsel %vm852_vm2, %v844_v35, %v860_v36 }
  0xb5   : > { %913 = vmatpush.msrb.mxu1 %v1953_v37 }
  0xb6   : > { %1590 = vmatmul.msk.f32.vlgmr.msrb.gmra.mxu1 %vm894_vm3, %v1959_v38 }
  0xb7   : > { %v346_v39 = vpop.f32.mrf.mxu2  ;;  %v366_v40 = vpop.f32.mrf.mxu3 }
  0xb8   : > { %v386_v41 = vpop.f32.mrf.mxu0  ;;  %v406_v42 = vpop.f32.mrf.mxu1 }
  0xbf   : > { %v426_v43 = vpop.f32.mrf.mxu2  ;;  %v446_v44 = vpop.f32.mrf.mxu3 }
  0xc0   : > { %v515_v45 = vpop.f32.mrf.mxu0  ;;  %v535_v46 = vpop.f32.mrf.mxu1 }
  0xc1   : > { %v645_v47 = vadd.f32 %v515_v45, %v326_v34  ;;  %v646_v55 = vadd.f32 %v535_v46, %v346_v39 }
  0xc3   : > { %v845_v48 = vadd.f32 %v1950_v32, %v645_v47 }
  0xc5   : > { %v861_v49 = vmul.f32 0.01, %v845_v48  ;;  %vm853_vm4 = vcmp.gt.f32.partialorder %v845_v48, 0.0 }
  0xc7   : > { %v555_v50 = vpop.f32.mrf.mxu2  ;;  %v575_v51 = vpop.f32.mrf.mxu3  ;;  %v1964_v52 = vsel %vm853_vm4, %v845_v48, %v861_v49 }
  0xc8   : > { %v595_v53 = vpop.f32.mrf.mxu0  ;;  %v615_v54 = vpop.f32.mrf.mxu1  ;;  %933 = vmatpush.msrb.mxu2 %v1964_v52  ;;  %v647_v56 = vadd.f32 %v555_v50, %v366_v40  ;;  %v648_v57 = vadd.f32 %v575_v51, %v386_v41 }
  0xc9   : > { %1591 = vmatmul.msk.f32.vlgmr.msrb.gmra.mxu2 %vm894_vm3, %v1959_v38  ;;  %v649_v7 = vadd.f32 %v595_v53, %v406_v42  ;;  %v650_v8 = vadd.f32 %v615_v54, %v426_v43 }
  0xcf   : > { %v635_v58 = vpop.f32.mrf.mxu2  ;;  %v709_v59 = vpop.f32.mrf.mxu3 }
  0xd0   : > { %v818_v60 = vadd.f32 %v709_v59, %v646_v55  ;;  %v729_v61 = vpop.f32.mrf.mxu0  ;;  %v749_v62 = vpop.f32.mrf.mxu1  ;;  %v651_v10 = vadd.f32 %v635_v58, %v446_v44 }
  0xd1   : > { %v819_v63 = vadd.f32 %v729_v61, %v647_v56  ;;  %v820_v0 = vadd.f32 %v749_v62, %v648_v57  ;;  %v1767_v57 = vmov 839922192  }
  0xd2   : > { %v846_v1 = vadd.f32 %v1950_v32, %v818_v60  ;;  %v1425_v58 = vunpack.c.l.s4 %v1767_v57 }
  0xd3   : > { %v847_v2 = vadd.f32 %v1950_v32, %v819_v63  ;;  %v848_v3 = vadd.f32 %v1950_v32, %v820_v0 }
  0xd4   : > { %v862_v4 = vmul.f32 0.01, %v846_v1  ;;  %vm854_vm5 = vcmp.gt.f32.partialorder %v846_v1, 0.0  ;;  %v1426_v63 = vunpack.c.0.s8 %v1425_v58 }
  0xd5   : > { %v863_v5 = vmul.f32 0.01, %v847_v2  ;;  %v864_v6 = vmul.f32 0.01, %v848_v3  ;;  %vm855_vm6 = vcmp.gt.f32.partialorder %v847_v2, 0.0  ;;  %vm856_vm7 = vcmp.gt.f32.partialorder %v848_v3, 0.0 }
  0xd6   : > { %v870_v9 = vsel %vm854_vm5, %v846_v1, %v862_v4  ;;  %v1423_v4 = vpop.permute.xlu0 %1422 }
  0xd7   : > { %v769_v11 = vpop.f32.mrf.mxu2  ;;  %v789_v12 = vpop.f32.mrf.mxu3  ;;  %953 = vmatpush.msrb.mxu3 %v870_v9  ;;  %v871_v13 = vsel %vm855_vm6, %v847_v2, %v863_v5  ;;  %v872_v14 = vsel %vm856_vm7, %v848_v3, %v864_v6 }
  0xd8   : > { %v821_v15 = vadd.f32 %v769_v11, %v649_v7  ;;  %v822_v16 = vadd.f32 %v789_v12, %v650_v8  ;;  %1592 = vmatmul.msk.f32.vlgmr.msrb.gmra.mxu3 %vm894_vm3, %v1959_v38  ;;  %v809_v17 = vpop.f32.mrf.mxu0  ;;  %973 = vmatpush.msra.mxu0 %v871_v13 }
  0xd9   : > { %v823_v18 = vadd.f32 %v809_v17, %v651_v10  ;;  %993 = vmatpush.msra.mxu1 %v872_v14  ;;  %1593 = vmatmul.msk.f32.vlgmr.msra.gmra.mxu0 %vm894_vm3, %v1959_v38 }
  0xda   : > { %v849_v19 = vadd.f32 %v1950_v32, %v821_v15  ;;  %v850_v20 = vadd.f32 %v1950_v32, %v822_v16  ;;  %1594 = vmatmul.msk.f32.vlgmr.msra.gmra.mxu1 %vm894_vm3, %v1959_v38 }
  0xdb   : > { %v851_v21 = vadd.f32 %v1950_v32, %v823_v18  ;;  %1109 = vmatpush.msrb.mxu1 %v1953_v37 }
  0xdc   : > { %v865_v22 = vmul.f32 0.01, %v849_v19  ;;  %v866_v23 = vmul.f32 0.01, %v850_v20  ;;  %vm857_vm8 = vcmp.gt.f32.partialorder %v849_v19, 0.0  ;;  %vm858_vm9 = vcmp.gt.f32.partialorder %v850_v20, 0.0 }
  0xdd   : > { %1189 = vmatpush.msra.mxu1 %v872_v14  ;;  %v867_v24 = vmul.f32 0.01, %v851_v21  ;;  %vm859_vm10 = vcmp.gt.f32.partialorder %v851_v21, 0.0 }
  0xde   : > { %v873_v25 = vsel %vm857_vm8, %v849_v19, %v865_v22  ;;  %v874_v26 = vsel %vm858_vm9, %v850_v20, %v866_v23 }
  0xdf   : > { %1013 = vmatpush.msra.mxu2 %v873_v25  ;;  %1033 = vmatpush.msra.mxu3 %v874_v26  ;;  %v875_v27 = vsel %vm859_vm10, %v851_v21, %v867_v24 }
  0xe0   : > { %1595 = vmatmul.msk.f32.vlgmr.msra.gmra.mxu2 %vm894_vm3, %v1959_v38  ;;  %1596 = vmatmul.msk.f32.vlgmr.msra.gmra.mxu3 %vm894_vm3, %v1959_v38 }
  0xe1   : > { %1129 = vmatpush.msrb.mxu2 %v1964_v52  ;;  %1149 = vmatpush.msrb.mxu3 %v870_v9 }
  0xe2   : > { %1053 = vmatpush.msrb.mxu0 %v875_v27  ;;  %1599 = vmatmul.msk.f32.vlgmr.msrb.gmra.mxu1 %vm894_vm3, %v1598_v28 }
  0xe3   : > { %1209 = vmatpush.msra.mxu2 %v873_v25  ;;  %1229 = vmatpush.msra.mxu3 %v874_v26 }
  0xe4   : > { %1597 = vmatmul.msk.f32.vlgmr.msrb.gmra.mxu0 %vm894_vm3, %v1959_v38  ;;  %1306 = vmatpush.msrb.mxu1 %v1964_v52 }
  0xe5   : > { %1169 = vmatpush.msra.mxu0 %v871_v13 }
  0xe7   : > { %1286 = vmatpush.msrb.mxu0 %v1953_v37 }
  0xe8   : > { %1600 = vmatmul.msk.f32.vlgmr.msrb.gmra.mxu2 %vm894_vm3, %v1598_v28  ;;  %1601 = vmatmul.msk.f32.vlgmr.msrb.gmra.mxu3 %vm894_vm3, %v1598_v28 }
  0xe9   : > { %1326 = vmatpush.msrb.mxu2 %v870_v9  ;;  %1346 = vmatpush.msrb.mxu3 %v871_v13  ;;  %v1427_v9 = vperm.slane %v1423_v4, %v1426_v63 }
  0xea   : > { %1603 = vmatmul.msk.f32.vlgmr.msra.gmra.mxu1 %vm894_vm3, %v1598_v28 }
  0xeb   : > { %1386 = vmatpush.msra.mxu1 %v873_v25 }
  0xec   : > { %1602 = vmatmul.msk.f32.vlgmr.msra.gmra.mxu0 %vm894_vm3, %v1598_v28 }
  0xed   : > { %1366 = vmatpush.msra.mxu0 %v872_v14 }
  0xf0   : > { %1604 = vmatmul.msk.f32.vlgmr.msra.gmra.mxu2 %vm894_vm3, %v1598_v28  ;;  %1605 = vmatmul.msk.f32.vlgmr.msra.gmra.mxu3 %vm894_vm3, %v1598_v28 }
  0xf2   : > { %1607 = vmatmul.msk.f32.vlgmr.msrb.gmra.mxu1 %vm894_vm3, %v1261_v29 }
  0xf4   : > { %1606 = vmatmul.msk.f32.vlgmr.msrb.gmra.mxu0 %vm894_vm3, %v1261_v29 }
  0xf8   : > { %1609 = vmatmul.msk.f32.vlgmr.msrb.gmra.mxu3 %vm894_vm3, %v1261_v29  ;;  %1608 = vmatmul.msk.f32.vlgmr.msrb.gmra.mxu2 %vm894_vm3, %v1261_v29 }
  0xfa   : > { %1611 = vmatmul.msk.f32.vlgmr.msra.gmra.mxu1 %vm894_vm3, %v1261_v29 }
  0xfc   : > { %1610 = vmatmul.msk.f32.vlgmr.msra.gmra.mxu0 %vm894_vm3, %v1261_v29 }
 0x133   : > { %v915_v30 = vpop.f32.mrf.mxu1 }
 0x14c   : > { %v935_v31 = vpop.f32.mrf.mxu2 }
 0x14d   : > { %v1066_v32 = vrot.slane %v935_v31, 4 }
 0x14f   : > { %v1070_v33 = vsel %vm272_vm0, %v915_v30, %v1066_v32 }
 0x150   : > { %1078 = vst [vmem:[%s2013_s16] sm:$0xff] %v1070_v33 }
 0x156   : > { %v975_v34 = vpop.f32.mrf.mxu0 }
 0x157   : > { %v995_v35 = vpop.f32.mrf.mxu1  ;;  %v1067_v36 = vrot.slane %v975_v34, 4 }
 0x15b   : > { %v955_v37 = vpop.f32.mrf.mxu3 }
 0x15c   : > { %v1071_v38 = vsel %vm272_vm0, %v955_v37, %v1067_v36 }
 0x15d   : > { %1079 = vst [vmem:[%s2013_s16 + $0x8] sm:$0xff] %v1071_v38 }
 0x15f   : > { %v1111_v41 = vpop.f32.mrf.mxu1 }
 0x161   : > { %v1055_v39 = vpop.f32.mrf.mxu0 }
 0x162   : > { %v1069_v40 = vrot.slane %v1055_v39, 4 }
 0x163   : > { %v1015_v42 = vpop.f32.mrf.mxu2  ;;  %v1035_v43 = vpop.f32.mrf.mxu3 }
 0x164   : > { %v1068_v44 = vrot.slane %v1015_v42, 4  ;;  %v1073_v45 = vsel %vm272_vm0, %v1035_v43, %v1069_v40  ;;  %v1234_v54 = vld [vmem:[%s2013_s16 + $0x4] sm:$0xff] }
 0x165   : > { %1081 = vst [vmem:[%s2013_s16 + $0x18] sm:$0xff] %v1073_v45 }
 0x166   : > { %v1072_v46 = vsel %vm272_vm0, %v995_v35, %v1068_v44 }
 0x167   : > { %1080 = vst [vmem:[%s2013_s16 + $0x10] sm:$0xff] %v1072_v46  ;;  %v1191_v49 = vpop.f32.mrf.mxu1 }
 0x169   : > { %v1171_v47 = vpop.f32.mrf.mxu0 }
 0x16a   : > { %v1245_v48 = vrot.slane %v1171_v47, 4 }
 0x16b   : > { %v1131_v50 = vpop.f32.mrf.mxu2  ;;  %v1151_v51 = vpop.f32.mrf.mxu3 }
 0x16c   : > { %v1244_v52 = vrot.slane %v1131_v50, 4  ;;  %v1248_v53 = vsel %vm272_vm0, %v1151_v51, %v1245_v48  ;;  %v1237_v2 = vld [vmem:[%s2013_s16 + $0x1c] sm:$0xf] }
 0x16e   : > { %v1247_v55 = vsel %vm272_vm0, %v1111_v41, %v1244_v52  ;;  %v1235_v56 = vld [vmem:[%s2013_s16 + $0xc] sm:$0xff]  ;;  %v1236_v7 = vld [vmem:[%s2013_s16 + $0x14] sm:$0xff] }
 0x16f   : > { %v1253_v59 = vadd.f32 %v1247_v55, %v1234_v54  ;;  %v1254_v60 = vadd.f32 %v1248_v53, %v1235_v56  ;;  %v1308_v62 = vpop.f32.mrf.mxu1 }
 0x170   : > { %v1400_v3 = vrot.slane %v1308_v62, 4 }
 0x171   : > { %v1288_v61 = vpop.f32.mrf.mxu0  ;;  %1257 = vst [vmem:[%s2013_s16 + $0x4] sm:$0xff] %v1253_v59 }
 0x172   : > { %1258 = vst [vmem:[%s2013_s16 + $0xc] sm:$0xff] %v1254_v60  ;;  %v1403_v11 = vsel %vm272_vm0, %v1288_v61, %v1400_v3 }
 0x173   : > { %v1211_v0 = vpop.f32.mrf.mxu2  ;;  %v1231_v1 = vpop.f32.mrf.mxu3 }
 0x174   : > { %v1246_v5 = vrot.slane %v1211_v0, 4  ;;  %v1256_v6 = vadd.f32 %v1237_v2, %v1231_v1 }
 0x176   : > { %v1249_v8 = vsel %vm272_vm0, %v1191_v49, %v1246_v5  ;;  %1260 = vst [vmem:[%s2013_s16 + $0x1c] sm:$0xf] %v1256_v6 }
 0x177   : > { %v1255_v10 = vadd.f32 %v1249_v8, %v1236_v7  ;;  %v1388_v14 = vpop.f32.mrf.mxu1 }
 0x178   : > { %v1415_v12 = vld [vmem:[%s2013_s16] sm:$0xff]  ;;  %v1402_v17 = vrot.slane %v1388_v14, 4 }
 0x179   : > { %1259 = vst [vmem:[%s2013_s16 + $0x14] sm:$0xff] %v1255_v10  ;;  %v1391_v13 = vld [vmem:[%s2013_s16 + $0x8] sm:$0xff]  ;;  %v1429_v15 = vadd.f32 %v1427_v9, %v1415_v12  ;;  %v1368_v18 = vpop.f32.mrf.mxu0 }
 0x17a   : > { %v1409_v16 = vadd.f32 %v1403_v11, %v1391_v13  ;;  %v1405_v26 = vsel %vm272_vm0, %v1368_v18, %v1402_v17 }
 0x17b   : > { %v1348_v19 = vpop.f32.mrf.mxu3  ;;  %v1328_v20 = vpop.f32.mrf.mxu2  ;;  %vm1433_vm11 = vcmp.gt.f32.partialorder %v1429_v15, 0.0  ;;  %v1437_v21 = vmul.f32 0.01, %v1429_v15 }
 0x17c   : > { %v1401_v22 = vrot.slane %v1348_v19, 4  ;;  %v1430_v23 = vadd.f32 %v1427_v9, %v1409_v16 }
 0x17d   : > { %v1441_v24 = vsel %vm1433_vm11, %v1429_v15, %v1437_v21 }
 0x17e   : > { %v1404_v25 = vsel %vm272_vm0, %v1328_v20, %v1401_v22  ;;  %vm1434_vm12 = vcmp.gt.f32.partialorder %v1430_v23, 0.0  ;;  %v1438_v27 = vmul.f32 0.01, %v1430_v23  ;;  %1445 = vst [vmem:[%s2013_s16] sm:$0xff] %v1441_v24 }
 0x180   : > { %v1392_v28 = vld [vmem:[%s2013_s16 + $0x10] sm:$0xff]  ;;  %v1393_v29 = vld [vmem:[%s2013_s16 + $0x18] sm:$0xff]  ;;  %v1442_v30 = vsel %vm1434_vm12, %v1430_v23, %v1438_v27 }
 0x181   : > { %v1410_v31 = vadd.f32 %v1404_v25, %v1392_v28  ;;  %v1411_v32 = vadd.f32 %v1405_v26, %v1393_v29  ;;  %1446 = vst [vmem:[%s2013_s16 + $0x8] sm:$0xff] %v1442_v30 }
 0x183   : > { %v1431_v33 = vadd.f32 %v1427_v9, %v1410_v31  ;;  %v1432_v34 = vadd.f32 %v1427_v9, %v1411_v32 }
 0x185   : > { %vm1435_vm13 = vcmp.gt.f32.partialorder %v1431_v33, 0.0  ;;  %vm1436_vm14 = vcmp.gt.f32.partialorder %v1432_v34, 0.0  ;;  %v1439_v35 = vmul.f32 0.01, %v1431_v33  ;;  %v1440_v36 = vmul.f32 0.01, %v1432_v34 }
 0x187   : > { %v1443_v37 = vsel %vm1435_vm13, %v1431_v33, %v1439_v35  ;;  %v1444_v38 = vsel %vm1436_vm14, %v1432_v34, %v1440_v36 }
 0x188   : > { %1447 = vst [vmem:[%s2013_s16 + $0x10] sm:$0xff] %v1443_v37 }
 0x189   : > { %1448 = vst [vmem:[%s2013_s16 + $0x18] sm:$0xff] %v1444_v38 }
 0x18a   : > { %1725 = shalt.err (!%p1722_p4)
}
 0x18b   : > { %1621 = dma.vmem_to_hbm [thread:$0]  (%p1847_p10), %s1464_s25, 512, %s1466_s26, %s1450_s22  }
 0x18c PF: > { %p1632_p5 = scmp.ge.s32.totalorder %s1764_s21, 2  ;;  %s1477_s7 = sand.u32 1, %s1752_s18  }
 0x18d   : > { %s1478_s15 = scalar_lea.sflag [#allocation5], %s1477_s7 }
 0x18e   : > { %p1628_p7 = pnand %p1632_p5, %p1851_p11 }
 0x190   : > { %p1629_p8 = pneg %p1628_p7 }
 0x192   : > { %1747 = dma.done.wait (%p1629_p8), %s1478_s15, 512  }
 0x193   : > { %1749 = vsyncadd (%p1629_p8), %s1478_s15, 4294966784  ;;  %p18_p9 = scmp.ge.s32.totalorder %s1823_s24, 6   ;;  %s2088_s18 = smov %s1756_s19 }
 0x194   : > { %s2089_s19 = smov %s1760_s20  ;;  %s2090_s20 = smov %s1835_s27 }
 0x195   : > { %s2091_s21 = smov %s1823_s24  ;;  %20 = sbr.rel (!%p18_p9) target bundleno = 5 (0x5), region = 97 }
 0x19a   :  { %1484 = vsyncpa [#allocation4], 1 }
 0x19b   :  { %1486 = vsyncpa [#allocation4 + $0x1], 1 }
 0x19c   :  { %1487 = vsyncpa [#allocation5], 1 }
 0x19d   :  { %1489 = vsyncpa [#allocation5 + $0x1], 1 }

</bundles_post_ra>
